<compile_context>
chip_gen: v7x
topology: tpu7x:2x2x1
jax: 0.10.0
libtpu: 0.0.40
codegen_flags: <defaults>
</compile_context>

<pallas_src>
import jax
import jax.numpy as jnp
from jax import lax
from jax.experimental import pallas as pl
from jax.experimental.pallas import tpu as pltpu


def _mlp_kernel(x_ref, w1_ref, b1_ref, w2_ref, b2_ref, w3_ref, b3_ref, o_ref):
    """3-layer MLP in transposed compute layout (batch on the 128-lane axis).

    x_ref  : (tb, in_size)        bf16 batch tile (un-transposed in HBM)
    w1_ref : (hidden, in_size)    bf16
    w2_ref : (hidden2, hidden)    bf16
    w3_ref : (hidden2, out_size)  f32 (column layout for the VPU path)
    b*_ref : (feat, 1)            f32, broadcast across lanes
    o_ref  : (out_size, tb)       f32 lane-dense output tile
    """
    # linear1 + ReLU: contract over in_size of both operands -> (hidden, tb).
    h1 = lax.dot_general(
        w1_ref[...], x_ref[...],
        dimension_numbers=(((1,), (1,)), ((), ())),
        preferred_element_type=jnp.float32)
    h1 = jnp.maximum(h1 + b1_ref[...], 0.0)

    # linear2 + ReLU: (hidden2, hidden) @ (hidden, tb) -> (hidden2, tb).
    h2 = jnp.dot(w2_ref[...], h1.astype(jnp.bfloat16),
                 preferred_element_type=jnp.float32)
    h2 = jnp.maximum(h2 + b2_ref[...], 0.0)

    # linear3: for out_size == 1 only 1 of 128 MXU output rows would be
    # useful, so do VPU multiply + XLU sublane-reduce instead.
    if o_ref.shape[0] == 1:
        h3 = jnp.sum(h2 * w3_ref[...], axis=0, keepdims=True) + b3_ref[...]
    else:
        h3 = lax.dot_general(
            w3_ref[...], h2,
            dimension_numbers=(((0,), (0,)), ((), ())),
            preferred_element_type=jnp.float32) + b3_ref[...]

    # Numerically stable sigmoid; exp and the approx reciprocal both run on
    # the EUP slot, no divides.
    e = jnp.exp(-jnp.abs(h3))
    r = pl.reciprocal(1.0 + e, approx=True)
    o_ref[...] = jnp.where(h3 >= 0.0, r, e * r)


def _round_up(a, b):
    return ((a + b - 1) // b) * b


def _pick_batch_tile(batch):
    """Lane-aligned batch tile.

    v5e/v6e (single TensorCore): fewest, biggest steps (cap 8192).
    v7x (two TensorCores sharing the grid): ~half the batch per tile so the
    "parallel" axis feeds both cores.
    """
    lane, cap = 128, 8192
    bp = _round_up(max(batch, 1), lane)
    try:
        kind = jax.devices()[0].device_kind.lower()
    except Exception:
        kind = ""
    two_tc = ("v7" in kind) or ("7x" in kind)
    if two_tc and bp >= 2 * lane:
        tb = _round_up(-(-bp // 2), lane)   # ceil(bp/2) rounded to lanes
    else:
        tb = bp
    return min(tb, cap)


def lj8_2_forward(x, params, *, tb=None):
    """Pallas forward of LJ8_2.

    x      : (B, in_size) float32
    params : (w1, b1, w2, b2, w3, b3) in PyTorch Linear layout:
             w: (out_features, in_features), b: (out_features,)
    returns: (B, out_size) float32
    """
    w1, b1, w2, b2, w3, b3 = params
    B, in_size = x.shape
    hidden, hidden2, out_size = w1.shape[0], w2.shape[0], w3.shape[0]

    if tb is None:
        tb = _pick_batch_tile(B)
    else:
        assert tb % 128 == 0, "batch tile must be a multiple of the 128-lane width"

    grid = (pl.cdiv(B, tb),)

    # bf16 matmul operands (fp32 accumulation inside the kernel).
    x_in = x.astype(jnp.bfloat16)
    w1b = w1.astype(jnp.bfloat16)
    w2b = w2.astype(jnp.bfloat16)
    w3c = w3.astype(jnp.float32).T              # (hidden2, out_size) column layout
    b1c = b1.reshape(hidden, 1).astype(jnp.float32)
    b2c = b2.reshape(hidden2, 1).astype(jnp.float32)
    b3c = b3.reshape(out_size, 1).astype(jnp.float32)

    def resident(shape):
        # Same (only) block every grid step -> stays VMEM-resident, no re-DMA.
        return pl.BlockSpec(shape, lambda i: (0, 0))

    flops = 2 * B * (in_size * hidden + hidden * hidden2 + hidden2 * out_size)
    bytes_accessed = (x_in.size * 2 + (w1b.size + w2b.size) * 2
                      + (w3c.size + b1c.size + b2c.size + b3c.size) * 4
                      + B * out_size * 4)

    out_t = pl.pallas_call(
        _mlp_kernel,
        out_shape=jax.ShapeDtypeStruct((out_size, B), jnp.float32),
        grid_spec=pl.GridSpec(
            grid=grid,
            in_specs=[
                pl.BlockSpec((tb, in_size), lambda i: (i, 0)),  # x batch tile
                resident((hidden, in_size)),                    # W1
                resident((hidden, 1)),                          # b1
                resident((hidden2, hidden)),                    # W2
                resident((hidden2, 1)),                         # b2
                resident((hidden2, out_size)),                  # W3 (column)
                resident((out_size, 1)),                        # b3
            ],
            out_specs=pl.BlockSpec((out_size, tb), lambda i: (0, i)),
        ),
        compiler_params=pltpu.CompilerParams(
            dimension_semantics=("parallel",)),
        cost_estimate=pl.CostEstimate(
            flops=flops, transcendentals=B * out_size,
            bytes_accessed=bytes_accessed),
    )(x_in, w1b, b1c, w2b, b2c, w3c, b3c)

    # (1, B) -> (B, 1) is a layout-trivial reshape when out_size == 1.
    if out_size == 1:
        return out_t.reshape(B, 1)
    return out_t.T


def init_params(key, in_size, hidden, hidden2, out_size):
    """Deterministic init mimicking nn.Linear's U(-1/sqrt(fan_in), 1/sqrt(fan_in)).

    Weights stored in PyTorch layout: (out_features, in_features), bias (out_features,).
    """
    ks = jax.random.split(key, 6)

    def lin(kw, kb, fan_in, fan_out):
        bound = 1.0 / jnp.sqrt(jnp.float32(fan_in))
        w = jax.random.uniform(kw, (fan_out, fan_in), jnp.float32, -bound, bound)
        b = jax.random.uniform(kb, (fan_out,), jnp.float32, -bound, bound)
        return w, b

    w1, b1 = lin(ks[0], ks[1], in_size, hidden)
    w2, b2 = lin(ks[2], ks[3], hidden, hidden2)
    w3, b3 = lin(ks[4], ks[5], hidden2, out_size)
    return (w1, b1, w2, b2, w3, b3)


def reference_forward(x, params):
    w1, b1, w2, b2, w3, b3 = params
    h = jnp.maximum(x @ w1.T + b1, 0.0)
    h = jnp.maximum(h @ w2.T + b2, 0.0)
    return jax.nn.sigmoid(h @ w3.T + b3)


if __name__ == "__main__":
    # LJ8: 8 atoms * 3 coords = 24 input features; 2 hidden layers; 1 CV output.
    in_size, hidden, hidden2, out_size = 24, 32, 16, 1
    batch = 256

    key = jax.random.PRNGKey(0)
    kx, kp = jax.random.split(key)
    x = jax.random.normal(kx, (batch, in_size), jnp.float32)
    params = init_params(kp, in_size, hidden, hidden2, out_size)

    out = lj8_2_forward(x, params)
    out = jax.block_until_ready(out)

    ref = reference_forward(x, params)
    assert out.shape == (batch, out_size)
    # bf16 matmul operands + approx EUP reciprocal -> relaxed tolerance.
    assert jnp.allclose(out, ref, atol=2e-2, rtol=0.0), "mismatch vs reference"
    print("KERNEL_OK")
</pallas_src>

<mosaic_0001>
module attributes {stable_mosaic.version = 11 : i64} {
  func.func @_mlp_kernel(%arg0: i32, %arg1: memref<256x24xbf16, #tpu.memory_space<vmem>>, %arg2: memref<32x24xbf16, #tpu.memory_space<vmem>>, %arg3: memref<32x1xf32, #tpu.memory_space<vmem>>, %arg4: memref<16x32xbf16, #tpu.memory_space<vmem>>, %arg5: memref<16x1xf32, #tpu.memory_space<vmem>>, %arg6: memref<16x1xf32, #tpu.memory_space<vmem>>, %arg7: memref<1x1xf32, #tpu.memory_space<vmem>>, %arg8: memref<1x256xf32, #tpu.memory_space<vmem>>) attributes {dimension_semantics = [#tpu.dimension_semantics<parallel>], iteration_bounds = array<i64: 1>, scalar_prefetch = 0 : i64, scratch_operands = 0 : i64, tpu.core_type = #tpu.core_type<tc>, window_params = [{transform_indices = @transform_0, window_bounds = array<i64: 256, 24>}, {pipeline_mode = #tpu.pipeline_mode<synchronous>, transform_indices = @transform_1, window_bounds = array<i64: 32, 24>}, {pipeline_mode = #tpu.pipeline_mode<synchronous>, transform_indices = @transform_2, window_bounds = array<i64: 32, 1>}, {pipeline_mode = #tpu.pipeline_mode<synchronous>, transform_indices = @transform_3, window_bounds = array<i64: 16, 32>}, {pipeline_mode = #tpu.pipeline_mode<synchronous>, transform_indices = @transform_4, window_bounds = array<i64: 16, 1>}, {pipeline_mode = #tpu.pipeline_mode<synchronous>, transform_indices = @transform_5, window_bounds = array<i64: 16, 1>}, {pipeline_mode = #tpu.pipeline_mode<synchronous>, transform_indices = @transform_6, window_bounds = array<i64: 1, 1>}, {transform_indices = @transform_7, window_bounds = array<i64: 1, 256>}]} {
    %c0 = arith.constant 0 : index
    %c0_0 = arith.constant 0 : index
    %0 = vector.load %arg2[%c0, %c0_0] : memref<32x24xbf16, #tpu.memory_space<vmem>>, vector<32x24xbf16>
    %c0_1 = arith.constant 0 : index
    %c0_2 = arith.constant 0 : index
    %1 = vector.load %arg1[%c0_1, %c0_2] : memref<256x24xbf16, #tpu.memory_space<vmem>>, vector<256x24xbf16>
    %cst = arith.constant dense<0.000000e+00> : vector<32x256xf32>
    %2 = tpu.matmul %0, %1, %cst {dimension_numbers = #tpu.dot_dimension_numbers<[1], [1], [0], [0], [0, 0, 1, 0], [], []>} : vector<32x24xbf16>, vector<256x24xbf16>, vector<32x256xf32> -> vector<32x256xf32>
    %c0_3 = arith.constant 0 : index
    %c0_4 = arith.constant 0 : index
    %3 = vector.load %arg3[%c0_3, %c0_4] : memref<32x1xf32, #tpu.memory_space<vmem>>, vector<32x1xf32>
    %4 = vector.broadcast %3 : vector<32x1xf32> to vector<32x256xf32>
    %5 = arith.addf %2, %4 : vector<32x256xf32>
    %cst_5 = arith.constant 0.000000e+00 : f32
    %6 = vector.broadcast %cst_5 : f32 to vector<32x256xf32>
    %7 = arith.maximumf %5, %6 : vector<32x256xf32>
    %c0_6 = arith.constant 0 : index
    %c0_7 = arith.constant 0 : index
    %8 = vector.load %arg4[%c0_6, %c0_7] : memref<16x32xbf16, #tpu.memory_space<vmem>>, vector<16x32xbf16>
    %9 = arith.truncf %7 : vector<32x256xf32> to vector<32x256xbf16>
    %cst_8 = arith.constant dense<0.000000e+00> : vector<16x256xf32>
    %10 = tpu.matmul %8, %9, %cst_8 {dimension_numbers = #tpu.dot_dimension_numbers<[1], [0], [0], [1], [0, 0, 1, 1], [], []>} : vector<16x32xbf16>, vector<32x256xbf16>, vector<16x256xf32> -> vector<16x256xf32>
    %c0_9 = arith.constant 0 : index
    %c0_10 = arith.constant 0 : index
    %11 = vector.load %arg5[%c0_9, %c0_10] : memref<16x1xf32, #tpu.memory_space<vmem>>, vector<16x1xf32>
    %12 = vector.broadcast %11 : vector<16x1xf32> to vector<16x256xf32>
    %13 = arith.addf %10, %12 : vector<16x256xf32>
    %cst_11 = arith.constant 0.000000e+00 : f32
    %14 = vector.broadcast %cst_11 : f32 to vector<16x256xf32>
    %15 = arith.maximumf %13, %14 : vector<16x256xf32>
    %c0_12 = arith.constant 0 : index
    %c0_13 = arith.constant 0 : index
    %16 = vector.load %arg6[%c0_12, %c0_13] : memref<16x1xf32, #tpu.memory_space<vmem>>, vector<16x1xf32>
    %17 = vector.broadcast %16 : vector<16x1xf32> to vector<16x256xf32>
    %18 = arith.mulf %15, %17 : vector<16x256xf32>
    %cst_14 = arith.constant dense<0.000000e+00> : vector<256xf32>
    %19 = vector.multi_reduction <add>, %18, %cst_14 [0] : vector<16x256xf32> to vector<256xf32>
    %20 = vector.shape_cast %19 : vector<256xf32> to vector<1x256xf32>
    %c0_15 = arith.constant 0 : index
    %c0_16 = arith.constant 0 : index
    %21 = vector.load %arg7[%c0_15, %c0_16] : memref<1x1xf32, #tpu.memory_space<vmem>>, vector<1x1xf32>
    %22 = vector.broadcast %21 : vector<1x1xf32> to vector<1x256xf32>
    %23 = arith.addf %20, %22 : vector<1x256xf32>
    %24 = math.absf %23 : vector<1x256xf32>
    %cst_17 = arith.constant 0.000000e+00 : f32
    %25 = vector.broadcast %cst_17 : f32 to vector<1x256xf32>
    %26 = arith.subf %25, %24 : vector<1x256xf32>
    %27 = math.exp %26 : vector<1x256xf32>
    %cst_18 = arith.constant 1.000000e+00 : f32
    %28 = vector.broadcast %cst_18 : f32 to vector<1x256xf32>
    %29 = arith.addf %28, %27 : vector<1x256xf32>
    %30 = tpu.reciprocal %29 {approx = true} : vector<1x256xf32> -> vector<1x256xf32>
    %cst_19 = arith.constant 0.000000e+00 : f32
    %31 = vector.broadcast %cst_19 : f32 to vector<1x256xf32>
    %32 = arith.cmpf oge, %23, %31 : vector<1x256xf32>
    %33 = arith.mulf %27, %30 : vector<1x256xf32>
    %34 = arith.select %32, %30, %33 : vector<1x256xi1>, vector<1x256xf32>
    %c0_20 = arith.constant 0 : index
    %c0_21 = arith.constant 0 : index
    %35 = vector.load %arg8[%c0_20, %c0_21] : memref<1x256xf32, #tpu.memory_space<vmem>>, vector<1x256xf32>
    tpu.vector_store %arg8[%c0_20, %c0_21], %34 {strides = array<i32>} : memref<1x256xf32, #tpu.memory_space<vmem>>, vector<1x256xf32>,
    return
  }
  func.func @transform_0(%arg0: i32) -> (i32, i32) {
    %c0_i32 = arith.constant 0 : i32
    %c0_i32_0 = arith.constant 0 : i32
    return %arg0, %c0_i32 : i32, i32
  }
  func.func @transform_1(%arg0: i32) -> (i32, i32) {
    %c0_i32 = arith.constant 0 : i32
    %c0_i32_0 = arith.constant 0 : i32
    %c0_i32_1 = arith.constant 0 : i32
    return %c0_i32, %c0_i32_0 : i32, i32
  }
  func.func @transform_2(%arg0: i32) -> (i32, i32) {
    %c0_i32 = arith.constant 0 : i32
    %c0_i32_0 = arith.constant 0 : i32
    %c0_i32_1 = arith.constant 0 : i32
    return %c0_i32, %c0_i32_0 : i32, i32
  }
  func.func @transform_3(%arg0: i32) -> (i32, i32) {
    %c0_i32 = arith.constant 0 : i32
    %c0_i32_0 = arith.constant 0 : i32
    %c0_i32_1 = arith.constant 0 : i32
    return %c0_i32, %c0_i32_0 : i32, i32
  }
  func.func @transform_4(%arg0: i32) -> (i32, i32) {
    %c0_i32 = arith.constant 0 : i32
    %c0_i32_0 = arith.constant 0 : i32
    %c0_i32_1 = arith.constant 0 : i32
    return %c0_i32, %c0_i32_0 : i32, i32
  }
  func.func @transform_5(%arg0: i32) -> (i32, i32) {
    %c0_i32 = arith.constant 0 : i32
    %c0_i32_0 = arith.constant 0 : i32
    %c0_i32_1 = arith.constant 0 : i32
    return %c0_i32, %c0_i32_0 : i32, i32
  }
  func.func @transform_6(%arg0: i32) -> (i32, i32) {
    %c0_i32 = arith.constant 0 : i32
    %c0_i32_0 = arith.constant 0 : i32
    %c0_i32_1 = arith.constant 0 : i32
    return %c0_i32, %c0_i32_0 : i32, i32
  }
  func.func @transform_7(%arg0: i32) -> (i32, i32) {
    %c0_i32 = arith.constant 0 : i32
    %c0_i32_0 = arith.constant 0 : i32
    return %c0_i32, %arg0 : i32, i32
  }
}

</mosaic_0001>

<bundles_post_ra>
// kernel: tpu_custom_call.1
= control target key start
LH: loop header
LB: loop body
LE: loop exit
PB: predicated region body
PF: predicated region fallthrough
CT: control target
= control target key end

     0   :  { %s732_s0 = inlined_call_operand.vmem [shape: bf16[256,24], index: 0, kind: input, shape index: {}]   ;;  %s733_s1 = inlined_call_operand.vmem [shape: bf16[32,24], index: 1, kind: input, shape index: {}]   ;;  %s734_s2 = inlined_call_operand.vmem [shape: f32[32,1], index: 2, kind: input, shape index: {}]   ;;  %s735_s3 = inlined_call_operand.vmem [shape: bf16[16,32], index: 3, kind: input, shape index: {}]   ;;  %s736_s4 = inlined_call_operand.vmem [shape: f32[16,1], index: 4, kind: input, shape index: {}]   ;;  %s737_s5 = inlined_call_operand.vmem [shape: f32[16,1], index: 5, kind: input, shape index: {}]   ;;  %s738_s6 = inlined_call_operand.<no memory space> [shape: f32[1,1], index: 6, kind: input, shape index: {}]   ;;  %s739_s7 = inlined_call_operand.hbm [shape: f32[1,256], index: 7, kind: output, shape index: {}]  }
   0x1   :  { %v12_v0 = vstv %s738_s6 }
   0x2   :  { %13 = vst [vmem:[#allocation2] sm:$0x1] %v12_v0 }
   0x3   :  { %v522_v1 = vld [vmem:[%s732_s0 + $0x40] sm:$0xff]   ;;  %vm180_vm0 = vcmask 195584   ;;  %v524_v3 = vld [vmem:[%s732_s0 + $0x48] sm:$0xff]   ;;  %v573_v4 = vmov 0   ;;  %v526_v8 = vld [vmem:[%s732_s0 + $0x50] sm:$0xff]  }
   0x4   :  { %v523_v2 = vld [vmem:[%s732_s0] sm:$0xff]   ;;  %509 = vmatprep.subr.msk.bf16.mxu0 %vm180_vm0, %v522_v1  ;;  %520 = vset.pattern.permute.xlu0 %v573_v4  ;;  %v525_v6 = vld [vmem:[%s732_s0 + $0x8] sm:$0xff]   ;;  %v527_v9 = vld [vmem:[%s732_s0 + $0x10] sm:$0xff]  }
   0x5   :  { %v188_v5 = vsel %vm180_vm0, %v523_v2, 0  ;;  %521 = vset.pattern.permute.xlu1 %v573_v4  ;;  %355 = vmatprep.mubr.bf16.mxu1 %v573_v4  ;;  %v191_v7 = vsel %vm180_vm0, %v525_v6, 0  ;;  %v538_v10 = vld [vmem:[%s733_s1] sm:$0xff]   ;;  %v194_v11 = vsel %vm180_vm0, %v527_v9, 0  ;;  %v528_v12 = vld [vmem:[%s732_s0 + $0x58] sm:$0xff]   ;;  %v68_v14 = vld [vmem:[%s734_s2 + $0x10] sm:$0xff] }
   0x6   :  { %490 = vmatpush3.bf16.xpose.msra.mxu0 %v188_v5  ;;  %505 = vmatprep.mubr.msk.bf16.mxu0 %vm180_vm0, %v538_v10  ;;  %v66_v13 = vld [vmem:[%s734_s2] sm:$0xff]  ;;  %v529_v15 = vld [vmem:[%s732_s0 + $0x18] sm:$0xff]   ;;  %v67_v16 = vld [vmem:[%s734_s2 + $0x8] sm:$0xff] }
   0x7   :  { %510 = vmatprep.subr.msk.bf16.mxu0 %vm180_vm0, %v524_v3  ;;  %72 = vperm.xlu0 %520, %v66_v13   ;;  %v69_v17 = vld [vmem:[%s734_s2 + $0x18] sm:$0xff] }
   0x8   :  { %82 = vperm.xlu1 %521, %v68_v14  }
   0xe   :  { %492 = vmatpush3.bf16.xpose.msra.mxu0 %v191_v7 }
   0xf   :  { %511 = vmatprep.subr.msk.bf16.mxu0 %vm180_vm0, %v526_v8 }
  0x16   :  { %494 = vmatpush3.bf16.xpose.msra.mxu0 %v194_v11 }
  0x17   :  { %512 = vmatprep.subr.msk.bf16.mxu0 %vm180_vm0, %v528_v12 }
  0x18   :  { %14 = vsyncpa [#allocation4], 0  ;;  %77 = vperm.xlu0 %520, %v67_v16   ;;  %87 = vperm.xlu1 %521, %v69_v17   ;;  %v302_v18 = vld [vmem:[%s736_s4] sm:$0xff]  ;;  %v303_v19 = vld [vmem:[%s736_s4 + $0x8] sm:$0xff]  ;;  %v197_v20 = vsel %vm180_vm0, %v529_v15, 0  ;;  %vm319_vm1 = vcmask 261120  }
  0x19   :  { %v530_v21 = vld [vmem:[%s732_s0 + $0x60] sm:$0xff]   ;;  %v371_v23 = vld [vmem:[%s737_s5 + $0x8] sm:$0xff]  ;;  %v534_v30 = vld [vmem:[%s732_s0 + $0x70] sm:$0xff]  }
  0x1a   :  { %v370_v22 = vld [vmem:[%s737_s5] sm:$0xff]  ;;  %v532_v27 = vld [vmem:[%s732_s0 + $0x68] sm:$0xff]   ;;  %v535_v31 = vld [vmem:[%s732_s0 + $0x30] sm:$0xff]  }
  0x1b   :  { %v531_v24 = vld [vmem:[%s732_s0 + $0x20] sm:$0xff]   ;;  %v533_v28 = vld [vmem:[%s732_s0 + $0x28] sm:$0xff]   ;;  %v206_v32 = vsel %vm180_vm0, %v535_v31, 0  ;;  %v536_v33 = vld [vmem:[%s732_s0 + $0x78] sm:$0xff]  }
  0x1c   :  { %306 = vperm.xlu0 %520, %v302_v18   ;;  %311 = vperm.xlu1 %521, %v303_v19   ;;  %v400_v25 = vld [vmem:[#allocation2] sm:$0x1]  ;;  %v200_v26 = vsel %vm180_vm0, %v531_v24, 0  ;;  %v203_v29 = vsel %vm180_vm0, %v533_v28, 0  ;;  %v537_v34 = vld [vmem:[%s732_s0 + $0x38] sm:$0xff]   ;;  %v539_v36 = vld [vmem:[%s733_s1 + $0x8] sm:$0xff]  }
  0x1d   :  { %v209_v35 = vsel %vm180_vm0, %v537_v34, 0  ;;  %v540_v5 = vld [vmem:[%s735_s3] sm:$0xff]   ;;  %s575_s3 = smov [#allocation3]  }
  0x1e   :  { %496 = vmatpush3.bf16.xpose.msra.mxu0 %v197_v20  ;;  %s459_s27 = sshll.u32 %s575_s3, 4  ;;  %s460_s27 = int_to_ptr.vmem [resolvable:$true] %s459_s27 }
  0x1f   :  { %513 = vmatprep.subr.msk.bf16.mxu0 %vm180_vm0, %v530_v21  ;;  %s549_s28 = scalar_lea.vmem %s460_s27, 32  ;;  %p554_p1 = scmp.lt.s32.totalorder %s460_s27, %s460_s27 }
  0x20   :  { %374 = vperm.xlu0 %520, %v370_v22   ;;  %379 = vperm.xlu1 %521, %v371_v23   ;;  %p550_p0 = scmp.ne.s32.totalorder %s460_s27, %s549_s28  ;;  %p555_p2 = scmp.lt.s32.totalorder %s549_s28, %s549_s28 }
  0x22   :  { %p556_p3 = por %p555_p2, %p554_p1 }
  0x24   :  { %403 = vperm.xlu0 %520, %v400_v25   ;;  %p557_p4 = pnand %p556_p3, %p550_p0 }
  0x26   :  { %498 = vmatpush3.bf16.xpose.msra.mxu0 %v200_v26  ;;  %v406_v26 = vlaneseq }
  0x27   :  { %514 = vmatprep.subr.msk.bf16.mxu0 %vm180_vm0, %v532_v27 }
  0x28   :  { %v407_v31 = vshrl.u32 %v406_v26, 7  ;;  %vm450_vm4 = vcmp.lt.s32.totalorder %v406_v26, 256 }
  0x2e   :  { %500 = vmatpush3.bf16.xpose.msra.mxu0 %v203_v29 }
  0x2f   :  { %515 = vmatprep.subr.msk.bf16.mxu0 %vm180_vm0, %v534_v30 }
  0x36   :  { %502 = vmatpush3.bf16.xpose.msra.mxu0 %v206_v32 }
  0x37   :  { %516 = vmatprep.subr.msk.bf16.mxu0 %vm180_vm0, %v536_v33 }
  0x3e   :  { %504 = vmatpush3.bf16.xpose.msra.mxu0 %v209_v35 }
  0x45   :  { %506 = vmatmul.mubr.msk.bf16.vlgmr.msra.gmra.mrb[0].mxu0 %vm180_vm0, %v538_v10 }
  0x46   :  { %507 = vmatprep.mubr.msk.bf16.mxu0 %vm180_vm0, %v539_v36 }
  0x4d   :  { %508 = vmatmul.mubr.msk.bf16.gmra.mrb[4].mxu0 %vm180_vm0, %v539_v36  ;;  %v408_v36 = vsub.s32 0, %v407_v31 }
  0x86   :  { %v73_v37 = vpop.permute.xlu0 %72 }
  0x87   :  { %v83_v46 = vpop.permute.xlu1 %82 }
  0x97   :  { %v78_v41 = vpop.permute.xlu0 %77  ;;  %v88_v57 = vpop.permute.xlu1 %87 }
  0x9b   :  { %v307_v6 = vpop.permute.xlu0 %306  ;;  %v312_v7 = vpop.permute.xlu1 %311 }
  0x9f   :  { %v375_v19 = vpop.permute.xlu0 %374  ;;  %v380_v20 = vpop.permute.xlu1 %379 }
 0x118   :  { %v269_v38 = vpop.f32.mrb[0].mxu0 }
 0x119   :  { %v270_v39 = vadd.f32 %v269_v38, %v73_v37  ;;  %v271_v40 = vpop.f32.mrb[1].mxu0  ;;  %v404_v38 = vpop.permute.xlu0 %403 }
 0x11a   :  { %v272_v42 = vadd.f32 %v271_v40, %v73_v37  ;;  %v273_v43 = vpop.f32.mrb[2].mxu0 }
 0x11b   :  { %v274_v44 = vadd.f32 %v273_v43, %v78_v41  ;;  %v275_v45 = vpop.f32.mrb[3].mxu0  ;;  %v288_v48 = vmax.f32 %v270_v39, 0.0 }
 0x11c   :  { %v276_v47 = vadd.f32 %v275_v45, %v78_v41  ;;  %v289_v50 = vmax.f32 %v272_v42, 0.0  ;;  %v409_v42 = vrot.slane %v404_v38, %v408_v36 }
 0x11d   :  { %v290_v49 = vmax.f32 %v274_v44, 0.0 }
 0x11e   :  { %v291_v51 = vmax.f32 %v276_v47, 0.0 }
 0x11f   :  { %v298_v52 = vpack.c.bf16 %v290_v49, %v288_v48 }
 0x120   :  { %v279_v53 = vpop.f32.mrb[4].mxu0  ;;  %v299_v54 = vpack.c.bf16 %v291_v51, %v289_v50 }
 0x121   :  { %v280_v55 = vadd.f32 %v279_v53, %v83_v46  ;;  %v281_v56 = vpop.f32.mrb[5].mxu0 }
 0x122   :  { %v282_v58 = vadd.f32 %v281_v56, %v83_v46  ;;  %v283_v59 = vpop.f32.mrb[6].mxu0  ;;  %323 = vmatprep.subr.bf16.mxu1 %v299_v54 }
 0x123   :  { %v284_v60 = vadd.f32 %v283_v59, %v88_v57  ;;  %v285_v61 = vpop.f32.mrb[7].mxu0  ;;  %324 = vmatpush1.bf16.msra.mxu1 %v298_v52  ;;  %v292_v63 = vmax.f32 %v280_v55, 0.0 }
 0x124   :  { %v286_v62 = vadd.f32 %v285_v61, %v88_v57  ;;  %v293_v1 = vmax.f32 %v282_v58, 0.0  ;;  %v574_v57 = vmov 1966171168  }
 0x125   :  { %v294_v0 = vmax.f32 %v284_v60, 0.0  ;;  %v434_v58 = vunpack.c.l.s4 %v574_v57 }
 0x126   :  { %v295_v2 = vmax.f32 %v286_v62, 0.0 }
 0x127   :  { %v300_v3 = vpack.c.bf16 %v294_v0, %v292_v63  ;;  %v435_v59 = vunpack.c.0.s8 %v434_v58 }
 0x128   :  { %v301_v4 = vpack.c.bf16 %v295_v2, %v293_v1 }
 0x129   :  { %v438_v1 = vsub.s32 %v435_v59, %v407_v31 }
 0x12a   :  { %325 = vmatprep.subr.bf16.mxu1 %v301_v4 }
 0x12b   :  { %326 = vmatpush1.bf16.msra.mxu1 %v300_v3 }
 0x12e   :  { %488 = vmatmul.mubr.msk.bf16.vlgmr.msra.gmra.mrb[0].mxu1 %vm319_vm1, %v540_v5 }
 0x201   :  { %v357_v8 = vpop.f32.mrb[0].mxu1 }
 0x202   :  { %v358_v9 = vadd.f32 %v357_v8, %v307_v6  ;;  %v359_v10 = vpop.f32.mrb[1].mxu1 }
 0x203   :  { %v360_v11 = vadd.f32 %v359_v10, %v307_v6  ;;  %v361_v12 = vpop.f32.mrb[2].mxu1 }
 0x204   :  { %v366_v13 = vmax.f32 %v358_v9, 0.0  ;;  %v362_v14 = vadd.f32 %v361_v12, %v312_v7  ;;  %v363_v15 = vpop.f32.mrb[3].mxu1 }
 0x205   :  { %v367_v16 = vmax.f32 %v360_v11, 0.0  ;;  %v364_v17 = vadd.f32 %v363_v15, %v312_v7 }
 0x206   :  { %v368_v18 = vmax.f32 %v362_v14, 0.0  ;;  %v382_v22 = vmul.f32 %v375_v19, %v366_v13 }
 0x207   :  { %v369_v21 = vmax.f32 %v364_v17, 0.0  ;;  %v383_v24 = vmul.f32 %v375_v19, %v367_v16 }
 0x208   :  { %v384_v23 = vmul.f32 %v380_v20, %v368_v18 }
 0x209   :  { %v385_v25 = vmul.f32 %v380_v20, %v369_v21 }
 0x20a   :  { %v386_v27 = vadd.f32 %v384_v23, %v382_v22 }
 0x20b   :  { %v393_v28 = vadd.f32 %v385_v25, %v383_v24 }
 0x20c   :  { %v387_v29 = vrot.slane %v386_v27, 4 }
 0x20d   :  { %v394_v30 = vrot.slane %v393_v28, 4 }
 0x20e   :  { %v388_v32 = vadd.f32 %v387_v29, %v386_v27 }
 0x20f   :  { %v395_v33 = vadd.f32 %v394_v30, %v393_v28 }
 0x210   :  { %v389_v34 = vrot.slane %v388_v32, 2 }
 0x211   :  { %v396_v35 = vrot.slane %v395_v33, 2 }
 0x212   :  { %v390_v37 = vadd.f32 %v389_v34, %v388_v32 }
 0x213   :  { %v397_v39 = vadd.f32 %v396_v35, %v395_v33 }
 0x214   :  { %v391_v40 = vrot.slane %v390_v37, 1 }
 0x215   :  { %v398_v41 = vrot.slane %v397_v39, 1 }
 0x216   :  { %v392_v43 = vadd.f32 %v391_v40, %v390_v37 }
 0x217   :  { %v399_v44 = vadd.f32 %v398_v41, %v397_v39 }
 0x218   :  { %v410_v45 = vadd.f32 %v409_v42, %v392_v43 }
 0x219   :  { %v411_v46 = vadd.f32 %v409_v42, %v399_v44 }
 0x21a   :  { %v412_v47 = vand.u32 2147483647, %v410_v45  ;;  %vm424_vm2 = vcmp.ge.f32.partialorder %v410_v45, 0.0 }
 0x21b   :  { %v413_v48 = vand.u32 2147483647, %v411_v46  ;;  %vm425_vm3 = vcmp.ge.f32.partialorder %v411_v46, 0.0 }
 0x21c   :  { %v414_v49 = vsub.f32 0.0, %v412_v47 }
 0x21d   :  { %v415_v50 = vsub.f32 0.0, %v413_v48 }
 0x21e   :  { %v416_v51 = vmul.f32 1.442695, %v414_v49 }
 0x21f   :  { %v418_v52 = vmul.f32 1.442695, %v415_v50 }
 0x220   :  { %541 = vpow2.f32 %v416_v51 }
 0x221   :  { %543 = vpow2.f32 %v418_v52 }
 0x22a   :  { %v542_v53 = vpop.eup %541 }
 0x22b   :  { %v544_v54 = vpop.eup %543  ;;  %v420_v55 = vadd.f32 1.0, %v542_v53 }
 0x22c   :  { %v421_v56 = vadd.f32 1.0, %v544_v54 }
 0x22d   :  { %545 = vrcp.f32 %v420_v55 }
 0x22e   :  { %547 = vrcp.f32 %v421_v56 }
 0x237   :  { %v546_v60 = vpop.eup %545 }
 0x238   :  { %v548_v61 = vpop.eup %547  ;;  %v426_v62 = vmul.f32 %v546_v60, %v542_v53 }
 0x239   :  { %v427_v63 = vmul.f32 %v548_v61, %v544_v54 }
 0x23a   :  { %v428_v0 = vsel %vm424_vm2, %v546_v60, %v426_v62 }
 0x23b   :  { %v429_v2 = vsel %vm425_vm3, %v548_v61, %v427_v63 }
 0x23c   :  { %v432_v3 = vcombine.low %v428_v0, %v429_v2 }
 0x23e   :  { %v439_v4 = vrot.slane %v432_v3, %v438_v1 }
 0x240   :  { %v446_v5 = vrot.slane %v439_v4, %v438_v1 }
 0x242   :  { %452 = vst.msk [vmem:[#allocation3] sm:$0x3] %vm450_vm4, %v446_v5 }
 0x243   :  { %560 = shalt.err (!%p557_p4)
}
 0x244   :  { %s561_s8 = scalar_lea.hbm %s739_s7, 32 }
 0x245   :  { %p562_p5 = scmp.ne.s32.totalorder %s739_s7, %s561_s8  ;;  %p565_p6 = scmp.lt.u32.totalorder %s561_s8, %s739_s7 }
 0x247   :  { %p567_p7 = pnand %p565_p6, %p562_p5 }
 0x249   :  { %570 = shalt.err (!%p567_p7)
}
 0x24a   :  { %462 = dma.vmem_to_hbm [thread:$0]  %s460_s27, 32, %s739_s7, [#allocation4]  }
 0x24b   :  { %571 = dma.done.wait [#allocation4], 32  }
 0x24c   :  { %572 = vsyncadd [#allocation4], 4294967264 }
 0x24d   :  { %466 = vsyncpa [#allocation4], 1 }

</bundles_post_ra>
